<compile_context>
chip_gen: v5e
topology: v5e:2x2
jax: 0.10.0
libtpu: 0.0.40
codegen_flags: <defaults>
</compile_context>

<pallas_src>
import jax
import jax.numpy as jnp
from jax.experimental import pallas as pl
from jax.experimental.pallas import tpu as pltpu

IN_FEATURE = 32    # stands in for args.IN_FEATURE
OUT_FEATURE = 16   # stands in for args.OUT_FEATURE

_PACK = 8                              # logical rows packed into one lane-dense row
_K_PACK = _PACK * IN_FEATURE           # 256  (fills the 256-deep v6e/v7x MXU)
_N_PACK = _PACK * OUT_FEATURE          # 128  (exactly one lane group -> unmasked vst)
_SMALL_M = 64                          # below this, a fused XLA dot beats the custom call


def _round_up(x, n):
    return ((x + n - 1) // n) * n


def prepare_params(weight, bias):
    """One-time parameter prep (at init, NOT per forward call).

    weight: (OUT_FEATURE, IN_FEATURE) torch layout; bias: (OUT_FEATURE,)
    Returns:
      w_packed: (256, 128) block-diagonal, 8 copies of W^T at offsets (32*r, 16*r)
      b_packed: (1, 128)   bias tiled 8x
    """
    w_t = weight.T                                            # (IN, OUT)
    w_packed = jnp.zeros((_K_PACK, _N_PACK), weight.dtype)
    for r in range(_PACK):
        w_packed = w_packed.at[r * IN_FEATURE:(r + 1) * IN_FEATURE,
                               r * OUT_FEATURE:(r + 1) * OUT_FEATURE].set(w_t)
    b_packed = jnp.tile(bias.reshape(1, OUT_FEATURE), (1, _PACK))   # (1, 128)
    return w_packed, b_packed


def _pack_rows(x2d):
    """(m, IN) -> (ceil(m/8), 256); zero-pads m to a multiple of 8."""
    m = x2d.shape[0]
    m_pad = _round_up(m, _PACK)
    if m_pad != m:
        x2d = jnp.pad(x2d, ((0, m_pad - m), (0, 0)))
    return x2d.reshape(m_pad // _PACK, _K_PACK), m


def linear_kernel(x_ref, w_ref, b_ref, o_ref):
    # One MXU matmul per (tm, 256) x-tile; f32 accumulation; broadcast bias add.
    acc = jnp.dot(x_ref[...], w_ref[...], preferred_element_type=jnp.float32)
    o_ref[...] = (acc + b_ref[...]).astype(o_ref.dtype)


def linear_forward(x, w_packed, b_packed, *, tm=256):
    """y = x.view(-1, IN_FEATURE) @ W^T + b via the packed-8 layout.

    tm is in *packed* rows (1 packed row == 8 logical rows), so the default
    tm=256 is a 2048-logical-row tile (~384 KiB per buffered input tile).
    """
    x2d = x.reshape(-1, IN_FEATURE)            # torch's x.view(-1, IN_FEATURE)
    x_packed, m = _pack_rows(x2d)
    mp = x_packed.shape[0]

    # Tiny batches: custom-call/grid overhead dominates -> plain fused XLA dot.
    if m <= _SMALL_M:
        y = (jnp.dot(x_packed, w_packed, preferred_element_type=jnp.float32)
             + b_packed).astype(x.dtype)
        y = y.reshape(mp * _PACK, OUT_FEATURE)
        return y if m == mp * _PACK else y[:m]

    # Row tile: multiple of 8 sublanes, capped by the packed batch size.
    tm = min(tm, _round_up(mp, 8))
    # Guarantee >= 2 grid steps so the "parallel" axis shards across both
    # TensorCores on v7x (harmless single-TC loop on v5e/v6e).
    if mp > 8:
        tm = min(tm, _round_up(pl.cdiv(mp, 2), 8))
    grid_m = pl.cdiv(mp, tm)

    # Honest (logical) cost hint -- advisory only.
    flops = 2 * m * IN_FEATURE * OUT_FEATURE
    bytes_accessed = 4 * (x_packed.size + w_packed.size + b_packed.size
                          + mp * _N_PACK)

    y_packed = pl.pallas_call(
        linear_kernel,
        out_shape=jax.ShapeDtypeStruct((mp, _N_PACK), x.dtype),
        grid=(grid_m,),
        in_specs=[
            pl.BlockSpec((tm, _K_PACK), lambda i: (i, 0)),       # x tile over packed M
            pl.BlockSpec((_K_PACK, _N_PACK), lambda i: (0, 0)),  # W resident
            pl.BlockSpec((1, _N_PACK), lambda i: (0, 0)),        # bias resident
        ],
        out_specs=pl.BlockSpec((tm, _N_PACK), lambda i: (i, 0)),  # lane-dense store
        compiler_params=pltpu.CompilerParams(
            dimension_semantics=("parallel",),                   # megacore on v7x
        ),
        cost_estimate=pl.CostEstimate(
            flops=flops, transcendentals=0, bytes_accessed=bytes_accessed),
    )(x_packed, w_packed, b_packed)

    # (mp, 128) is bit-identical to row-major (mp*8, 16): free metadata reshape.
    y = y_packed.reshape(mp * _PACK, OUT_FEATURE)
    return y if m == mp * _PACK else y[:m]


if __name__ == "__main__":
    key = jax.random.PRNGKey(0)
    kx1, kx2, kx3, kw, kb = jax.random.split(key, 5)

    # Deterministic parameter init mimicking torch.nn.Linear default.
    bound = 1.0 / (IN_FEATURE ** 0.5)
    weight = jax.random.uniform(kw, (OUT_FEATURE, IN_FEATURE),
                                minval=-bound, maxval=bound, dtype=jnp.float32)
    bias = jax.random.uniform(kb, (OUT_FEATURE,),
                              minval=-bound, maxval=bound, dtype=jnp.float32)

    # One-time parameter preparation (block-diagonal pack), outside the hot path.
    w_packed, b_packed = prepare_params(weight, bias)

    def ref(xin):
        return xin.reshape(-1, IN_FEATURE) @ weight.T + bias

    # 1) Pallas path: (2, 128, 32) -> 256 rows (multiple of 8).
    x1 = jax.random.normal(kx1, (2, 128, IN_FEATURE), dtype=jnp.float32)
    y1 = linear_forward(x1, w_packed, b_packed)
    jax.block_until_ready(y1)
    assert y1.shape == (256, OUT_FEATURE)
    assert jnp.allclose(y1, ref(x1), atol=1e-5, rtol=1e-5)

    # 2) Pallas path with M not a multiple of 8 (exercises pad + trailing row slice).
    x2 = jax.random.normal(kx2, (70, IN_FEATURE), dtype=jnp.float32)
    y2 = linear_forward(x2, w_packed, b_packed)
    jax.block_until_ready(y2)
    assert y2.shape == (70, OUT_FEATURE)
    assert jnp.allclose(y2, ref(x2), atol=1e-5, rtol=1e-5)

    # 3) Tiny-batch fast path: (2, 4, 32) -> 8 rows, plain fused XLA dot.
    x3 = jax.random.normal(kx3, (2, 4, IN_FEATURE), dtype=jnp.float32)
    y3 = linear_forward(x3, w_packed, b_packed)
    jax.block_until_ready(y3)
    assert y3.shape == (8, OUT_FEATURE)
    assert jnp.allclose(y3, ref(x3), atol=1e-5, rtol=1e-5)

    print("KERNEL_OK")
</pallas_src>

<mosaic_0001>
module attributes {stable_mosaic.version = 11 : i64} {
  func.func @linear_kernel(%arg0: i32, %arg1: memref<16x256xf32, #tpu.memory_space<vmem>>, %arg2: memref<256x128xf32, #tpu.memory_space<vmem>>, %arg3: memref<1x128xf32, #tpu.memory_space<vmem>>, %arg4: memref<16x128xf32, #tpu.memory_space<vmem>>) attributes {dimension_semantics = [#tpu.dimension_semantics<parallel>], iteration_bounds = array<i64: 2>, scalar_prefetch = 0 : i64, scratch_operands = 0 : i64, tpu.core_type = #tpu.core_type<tc>, window_params = [{transform_indices = @transform_0, window_bounds = array<i64: 16, 256>}, {pipeline_mode = #tpu.pipeline_mode<synchronous>, transform_indices = @transform_1, window_bounds = array<i64: 256, 128>}, {pipeline_mode = #tpu.pipeline_mode<synchronous>, transform_indices = @transform_2, window_bounds = array<i64: 1, 128>}, {transform_indices = @transform_3, window_bounds = array<i64: 16, 128>}]} {
    %c0 = arith.constant 0 : index
    %c0_0 = arith.constant 0 : index
    %0 = vector.load %arg1[%c0, %c0_0] : memref<16x256xf32, #tpu.memory_space<vmem>>, vector<16x256xf32>
    %c0_1 = arith.constant 0 : index
    %c0_2 = arith.constant 0 : index
    %1 = vector.load %arg2[%c0_1, %c0_2] : memref<256x128xf32, #tpu.memory_space<vmem>>, vector<256x128xf32>
    %cst = arith.constant dense<0.000000e+00> : vector<16x128xf32>
    %2 = tpu.matmul %0, %1, %cst {dimension_numbers = #tpu.dot_dimension_numbers<[1], [0], [0], [1], [0, 0, 1, 1], [], []>} : vector<16x256xf32>, vector<256x128xf32>, vector<16x128xf32> -> vector<16x128xf32>
    %c0_3 = arith.constant 0 : index
    %c0_4 = arith.constant 0 : index
    %3 = vector.load %arg3[%c0_3, %c0_4] : memref<1x128xf32, #tpu.memory_space<vmem>>, vector<1x128xf32>
    %4 = vector.broadcast %3 : vector<1x128xf32> to vector<16x128xf32>
    %5 = arith.addf %2, %4 : vector<16x128xf32>
    %c0_5 = arith.constant 0 : index
    %c0_6 = arith.constant 0 : index
    %6 = vector.load %arg4[%c0_5, %c0_6] : memref<16x128xf32, #tpu.memory_space<vmem>>, vector<16x128xf32>
    tpu.vector_store %arg4[%c0_5, %c0_6], %5 {strides = array<i32>} : memref<16x128xf32, #tpu.memory_space<vmem>>, vector<16x128xf32>,
    return
  }
  func.func @transform_0(%arg0: i32) -> (i32, i32) {
    %c0_i32 = arith.constant 0 : i32
    %c0_i32_0 = arith.constant 0 : i32
    return %arg0, %c0_i32 : i32, i32
  }
  func.func @transform_1(%arg0: i32) -> (i32, i32) {
    %c0_i32 = arith.constant 0 : i32
    %c0_i32_0 = arith.constant 0 : i32
    %c0_i32_1 = arith.constant 0 : i32
    return %c0_i32, %c0_i32_0 : i32, i32
  }
  func.func @transform_2(%arg0: i32) -> (i32, i32) {
    %c0_i32 = arith.constant 0 : i32
    %c0_i32_0 = arith.constant 0 : i32
    %c0_i32_1 = arith.constant 0 : i32
    return %c0_i32, %c0_i32_0 : i32, i32
  }
  func.func @transform_3(%arg0: i32) -> (i32, i32) {
    %c0_i32 = arith.constant 0 : i32
    %c0_i32_0 = arith.constant 0 : i32
    return %arg0, %c0_i32 : i32, i32
  }
}

</mosaic_0001>

<bundles_post_ra>
// kernel: tpu_custom_call.1
= control target key start
LH: loop header
LB: loop body
LE: loop exit
PB: predicated region body
PF: predicated region fallthrough
CT: control target
= control target key end

     0   :  { %8 = vsyncpa [#allocation3], 0  ;;  %s823_s0 = inlined_call_operand.hbm [shape: f32[32,256], index: 0, kind: input, shape index: {}]   ;;  %s824_s1 = inlined_call_operand.hbm [shape: f32[256,128], index: 1, kind: input, shape index: {}]   ;;  %s825_s2 = inlined_call_operand.vmem [shape: f32[1,128], index: 2, kind: input, shape index: {}]   ;;  %s826_s3 = inlined_call_operand.hbm [shape: f32[32,128], index: 3, kind: output, shape index: {}]  }
   0x1   :  { %10 = vsyncpa [#allocation3 + $0x1], 0 }
   0x2   :  { %11 = vsyncpa [#allocation6], 0 }
   0x3   :  { %12 = vsyncpa [#allocation4], 0 }
   0x4   :  { %14 = vsyncpa [#allocation4 + $0x1], 0  ;;  %s673_s12 = smov 0   ;;  %s675_s13 = smov 0  }
   0x5   :  { %s677_s14 = smov 0   ;;  %s679_s15 = smov 0  }
   0x6 LB: > { %s694_s16 = sadd.s32 4294967295, %s644_s15   ;;  %s398_s17 = sadd.s32 4294967294, %s644_s15   ;;  %s644_s15 = sphi %s679_s15, %s836_s15   ;;  %s640_s14 = sphi %s677_s14, %s835_s14   ;;  %s636_s13 = sphi %s675_s13, %s834_s13   ;;  %s632_s12 = sphi %s673_s12, %s833_s12  }
   0x7   : > { %p40_p0 = scmp.ne.s32.totalorder %s636_s13, %s632_s12  ;;  %p41_p1 = scmp.eq.s32.totalorder %s694_s16, 0 }
   0x8   : > { %p106_p2 = scmp.eq.s32.totalorder %s694_s16, 1  ;;  %p112_p3 = scmp.eq.s32.totalorder %s398_s17, 1 }
   0x9   : > { %p703_p4 = por %p41_p1, %p40_p0  ;;  %p399_p5 = scmp.ge.s32.totalorder %s644_s15, 1 }
   0xa   : > { %p708_p6 = por %p112_p3, %p40_p0  ;;  %p119_p7 = scmp.lt.s32.totalorder %s644_s15, 3 }
   0xb   : > { %s130_s22 = sshll.u32 %s824_s1, 4  ;;  %s646_s24 = smov [#allocation5]   ;;  %s131_s22 = int_to_ptr.hbm [resolvable:$true] %s130_s22 }
   0xc   : > { %p716_p8 = pnand %p399_p5, %p119_p7  ;;  %s132_s25 = sshll.u32 %s646_s24, 4  ;;  %s133_s25 = int_to_ptr.vmem [resolvable:$true] %s132_s25 }
   0xd   : > { %s726_s26 = sadd.s32 1, %s644_s15   ;;  %s647_s27 = smov 128  }
   0xe   : > { %p458_p9 = pneg %p716_p8  ;;  %s648_s28 = smov 8  }
   0xf   : > { %s24_s29 = ssub.s32 %s644_s15, %s726_s26  ;;  %s27_s30 = sadd.s32 1, %s640_s14 }
  0x10   : > { %p459_p10 = pnand %p458_p9, %p41_p1  ;;  %p25_p12 = scmp.eq.s32.totalorder %s24_s29, 0 }
  0x11   : > { %p34_p13 = scmp.ne.s32.totalorder %s640_s14, %s636_s13  ;;  %p35_p0 = scmp.eq.s32.totalorder %s644_s15, 0 }
  0x12   : > { %461 = dma.hbm_to_vmem [thread:$0]  (!%p459_p10), %s131_s22, 4096, %s133_s25, [#allocation6], %s647_s27, %s647_s27, %s648_s28  }
  0x13   : > { %p471_p3 = scmp.lt.s32.totalorder %s644_s15, 2  ;;  %p36_p5 = por %p35_p0, %p34_p13 }
  0x14   : > { %s736_s4 = scalar_select %p25_p12, %s640_s14, %s27_s30  }
  0x15   : > { %p740_p7 = por %p106_p2, %p34_p13  ;;  %s149_s6 = sand.u32 1, %s640_s14  }
  0x16   : > { %s416_s7 = sshll.u32 %s644_s15, 5  ;;  %s402_s8 = sshll.u32 %s149_s6, 5 }
  0x17   : > { %s159_s11 = scalar_lea.hbm %s823_s0, %s416_s7  ;;  %s153_s20 = scalar_lea.vmem [#allocation2], %s402_s8 }
  0x18   : > { %s160_s17 = sshll.u32 %s159_s11, 4  ;;  %s162_s21 = sshll.u32 %s153_s20, 4  ;;  %s161_s17 = int_to_ptr.hbm [resolvable:$true] %s160_s17  ;;  %s163_s21 = int_to_ptr.vmem [resolvable:$true] %s162_s21 }
  0x19   : > { %p751_p9 = pnand %p471_p3, %p36_p5  ;;  %s150_s24 = scalar_lea.sflag [#allocation3], %s149_s6 }
  0x1a   : > { %s544_s25 = sshra.s32 %s161_s17, 4  ;;  %s551_s30 = scalar_lea.hbm %s823_s0, 64  ;;  %s545_s25 = int_to_ptr.hbm [resolvable:$true] %s544_s25 }
  0x1b   : > { %s546_s27 = scalar_lea.hbm %s545_s25, 32  ;;  %p548_p10 = pneg %p751_p9 }
  0x1c   : > { %p547_p2 = scmp.ne.s32.totalorder %s545_s25, %s546_s27  ;;  %p552_p0 = scmp.lt.s32.totalorder %s545_s25, %s823_s0 }
  0x1d   : > { %p553_p3 = scmp.lt.s32.totalorder %s551_s30, %s546_s27 }
  0x1e   : > { %p549_p12 = pnand %p548_p10, %p547_p2 }
  0x1f   : > { %p554_p5 = por %p553_p3, %p552_p0 }
  0x20   : > { %p550_p13 = pneg %p549_p12 }
  0x22   : > { %p555_p11 = pnand %p554_p5, %p550_p13 }
  0x24   : > { %558 = shalt.err (!%p555_p11)
}
  0x25   : > { %s649_s6 = smov 256   ;;  %s650_s9 = smov 16  }
  0x26   : > { %465 = dma.hbm_to_vmem [thread:$0]  (!%p751_p9), %s161_s17, 512, %s163_s21, %s150_s24, %s649_s6, %s649_s6, %s650_s9  }
  0x27   : > { %174 = sbr.rel (%p716_p8) target bundleno = 219 (0xdb), region = 32  ;;  %s768_s10 = sand.u32 (!%p716_p8), 1, %s636_s13  }
  0x28   : > { %s407_s11 = sshll.u32 (!%p716_p8), %s768_s10, 5  ;;  %s177_s20 = scalar_lea.sflag (!%p716_p8), [#allocation3], %s768_s10 }
  0x29   : > { %s772_s25 = scalar_lea.vmem (!%p716_p8), [#allocation2], %s407_s11 }
  0x2c   : > { %619 = dma.done.wait (%p703_p4), %s177_s20, 512  }
  0x2d   : > { %621 = vsyncadd (%p703_p4), %s177_s20, 4294966784 }
  0x2e   : > { %623 = dma.done.wait (%p41_p1), [#allocation6], 4096  }
  0x2f   : > { %625 = vsyncadd (%p41_p1), [#allocation6], 4294963200  ;;  %v230_v0 = vld [vmem:[#allocation5 + $0x78] sm:$0xff]  ;;  %v229_v1 = vld [vmem:[#allocation5 + $0x70] sm:$0xff]  ;;  %s409_s18 = sshll.u32 %s768_s10, 4  ;;  %s417_s21 = sshll.u32 %s694_s16, 4 }
  0x30   : > { %v246_v2 = vld [vmem:[#allocation5 + $0xf8] sm:$0xff]  ;;  %418 = vmatpush.msra.mxu2 %v230_v0  ;;  %v245_v3 = vld [vmem:[#allocation5 + $0xf0] sm:$0xff]  ;;  %v228_v4 = vld [vmem:[#allocation5 + $0x68] sm:$0xff]  ;;  %251 = vmatpush.msra.mxu0 %v230_v0  ;;  %s311_s27 = scalar_lea.hbm %s826_s3, %s417_s21  ;;  %s208_s28 = scalar_lea.vmem [#allocation7], %s409_s18 }
  0x31   : > { %434 = vmatpush.msra.mxu3 %v246_v2  ;;  %v244_v5 = vld [vmem:[#allocation5 + $0xe8] sm:$0xff]  ;;  %274 = vmatpush.msra.mxu1 %v246_v2  ;;  %v227_v6 = vld [vmem:[#allocation5 + $0x60] sm:$0xff]  ;;  %v226_v8 = vld [vmem:[#allocation5 + $0x58] sm:$0xff]  ;;  %s312_s29 = sshll.u32 %s208_s28, 4  ;;  %s314_s30 = sshll.u32 %s311_s27, 4  ;;  %s313_s29 = int_to_ptr.vmem [resolvable:$true] %s312_s29  ;;  %s315_s30 = int_to_ptr.hbm [resolvable:$true] %s314_s30 }
  0x32   : > { %419 = vmatpush.msra.mxu2 %v229_v1  ;;  %252 = vmatpush.msra.mxu0 %v229_v1  ;;  %v243_v7 = vld [vmem:[#allocation5 + $0xe0] sm:$0xff]  ;;  %v242_v9 = vld [vmem:[#allocation5 + $0xd8] sm:$0xff]  ;;  %v225_v10 = vld [vmem:[#allocation5 + $0x50] sm:$0xff]  ;;  %s300_s16 = scalar_lea.sflag [#allocation4], %s768_s10  ;;  %s588_s7 = sshra.s32 %s315_s30, 4  ;;  %s589_s7 = int_to_ptr.hbm [resolvable:$true] %s588_s7 }
  0x33   : > { %435 = vmatpush.msra.mxu3 %v245_v3  ;;  %275 = vmatpush.msra.mxu1 %v245_v3  ;;  %v241_v11 = vld [vmem:[#allocation5 + $0xd0] sm:$0xff]  ;;  %v224_v12 = vld [vmem:[#allocation5 + $0x48] sm:$0xff]  ;;  %v223_v14 = vld [vmem:[#allocation5 + $0x40] sm:$0xff]  ;;  %s590_s8 = scalar_lea.hbm %s589_s7, 16  ;;  %s594_s11 = scalar_lea.hbm %s826_s3, 32 }
  0x34   : > { %420 = vmatpush.msra.mxu2 %v228_v4  ;;  %253 = vmatpush.msra.mxu0 %v228_v4  ;;  %v240_v13 = vld [vmem:[#allocation5 + $0xc8] sm:$0xff]  ;;  %v239_v15 = vld [vmem:[#allocation5 + $0xc0] sm:$0xff]  ;;  %v222_v16 = vld [vmem:[#allocation5 + $0x38] sm:$0xff]  ;;  %p591_p1 = scmp.ne.s32.totalorder %s589_s7, %s590_s8  ;;  %p595_p11 = scmp.lt.s32.totalorder %s589_s7, %s826_s3 }
  0x35   : > { %436 = vmatpush.msra.mxu3 %v244_v5  ;;  %276 = vmatpush.msra.mxu1 %v244_v5  ;;  %v238_v17 = vld [vmem:[#allocation5 + $0xb8] sm:$0xff]  ;;  %v221_v18 = vld [vmem:[#allocation5 + $0x30] sm:$0xff]  ;;  %v220_v20 = vld [vmem:[#allocation5 + $0x28] sm:$0xff]  ;;  %p596_p9 = scmp.lt.s32.totalorder %s594_s11, %s590_s8 }
  0x36   : > { %421 = vmatpush.msra.mxu2 %v227_v6  ;;  %254 = vmatpush.msra.mxu0 %v227_v6  ;;  %v237_v19 = vld [vmem:[#allocation5 + $0xb0] sm:$0xff]  ;;  %v236_v21 = vld [vmem:[#allocation5 + $0xa8] sm:$0xff]  ;;  %v219_v22 = vld [vmem:[#allocation5 + $0x20] sm:$0xff]  ;;  %p592_p4 = pnand %p591_p1, %p740_p7 }
  0x37   : > { %437 = vmatpush.msra.mxu3 %v243_v7  ;;  %277 = vmatpush.msra.mxu1 %v243_v7  ;;  %v235_v23 = vld [vmem:[#allocation5 + $0xa0] sm:$0xff]  ;;  %v218_v24 = vld [vmem:[#allocation5 + $0x18] sm:$0xff]  ;;  %v217_v26 = vld [vmem:[#allocation5 + $0x10] sm:$0xff]  ;;  %p597_p2 = por %p596_p9, %p595_p11 }
  0x38   : > { %422 = vmatpush.msra.mxu2 %v226_v8  ;;  %255 = vmatpush.msra.mxu0 %v226_v8  ;;  %v234_v25 = vld [vmem:[#allocation5 + $0x98] sm:$0xff]  ;;  %v233_v27 = vld [vmem:[#allocation5 + $0x90] sm:$0xff]  ;;  %v216_v28 = vld [vmem:[#allocation5 + $0x8] sm:$0xff]  ;;  %p593_p8 = pneg %p592_p4 }
  0x39   : > { %438 = vmatpush.msra.mxu3 %v242_v9  ;;  %278 = vmatpush.msra.mxu1 %v242_v9  ;;  %v232_v29 = vld [vmem:[#allocation5 + $0x88] sm:$0xff]  ;;  %v215_v30 = vld [vmem:[#allocation5] sm:$0xff]  ;;  %v213_v32 = vld [vmem:[%s772_s25 + $0x10] sm:$0xff] }
  0x3a   : > { %423 = vmatpush.msra.mxu2 %v225_v10  ;;  %256 = vmatpush.msra.mxu0 %v225_v10  ;;  %v231_v31 = vld [vmem:[#allocation5 + $0x80] sm:$0xff]  ;;  %v214_v33 = vld [vmem:[%s772_s25 + $0x18] sm:$0xff]  ;;  %v212_v35 = vld [vmem:[%s772_s25 + $0x8] sm:$0xff]  ;;  %p598_p10 = pnand %p597_p2, %p593_p8 }
  0x3b   : > { %439 = vmatpush.msra.mxu3 %v241_v11  ;;  %279 = vmatpush.msra.mxu1 %v241_v11  ;;  %v211_v34 = vld [vmem:[%s772_s25] sm:$0xff] }
  0x3c   : > { %424 = vmatpush.msra.mxu2 %v224_v12  ;;  %257 = vmatpush.msra.mxu0 %v224_v12  ;;  %v513_v36 = vld [vmem:[%s825_s2] ss:$0 sm:$0xff] }
  0x3d   : > { %440 = vmatpush.msra.mxu3 %v240_v13  ;;  %280 = vmatpush.msra.mxu1 %v240_v13 }
  0x3e   : > { %425 = vmatpush.msra.mxu2 %v223_v14  ;;  %258 = vmatpush.msra.mxu0 %v223_v14 }
  0x3f   : > { %441 = vmatpush.msra.mxu3 %v239_v15  ;;  %281 = vmatpush.msra.mxu1 %v239_v15 }
  0x40   : > { %426 = vmatpush.msra.mxu2 %v222_v16  ;;  %259 = vmatpush.msra.mxu0 %v222_v16 }
  0x41   : > { %442 = vmatpush.msra.mxu3 %v238_v17  ;;  %282 = vmatpush.msra.mxu1 %v238_v17 }
  0x42   : > { %427 = vmatpush.msra.mxu2 %v221_v18  ;;  %260 = vmatpush.msra.mxu0 %v221_v18 }
  0x43   : > { %443 = vmatpush.msra.mxu3 %v237_v19  ;;  %283 = vmatpush.msra.mxu1 %v237_v19 }
  0x44   : > { %428 = vmatpush.msra.mxu2 %v220_v20  ;;  %261 = vmatpush.msra.mxu0 %v220_v20 }
  0x45   : > { %444 = vmatpush.msra.mxu3 %v236_v21  ;;  %284 = vmatpush.msra.mxu1 %v236_v21 }
  0x46   : > { %429 = vmatpush.msra.mxu2 %v219_v22  ;;  %262 = vmatpush.msra.mxu0 %v219_v22 }
  0x47   : > { %445 = vmatpush.msra.mxu3 %v235_v23  ;;  %285 = vmatpush.msra.mxu1 %v235_v23 }
  0x48   : > { %430 = vmatpush.msra.mxu2 %v218_v24  ;;  %263 = vmatpush.msra.mxu0 %v218_v24 }
  0x49   : > { %446 = vmatpush.msra.mxu3 %v234_v25  ;;  %286 = vmatpush.msra.mxu1 %v234_v25 }
  0x4a   : > { %431 = vmatpush.msra.mxu2 %v217_v26  ;;  %264 = vmatpush.msra.mxu0 %v217_v26 }
  0x4b   : > { %447 = vmatpush.msra.mxu3 %v233_v27  ;;  %287 = vmatpush.msra.mxu1 %v233_v27 }
  0x4c   : > { %432 = vmatpush.msra.mxu2 %v216_v28  ;;  %265 = vmatpush.msra.mxu0 %v216_v28 }
  0x4d   : > { %448 = vmatpush.msra.mxu3 %v232_v29  ;;  %288 = vmatpush.msra.mxu1 %v232_v29 }
  0x4e   : > { %433 = vmatpush.msra.mxu2 %v215_v30  ;;  %266 = vmatpush.msra.mxu0 %v215_v30 }
  0x4f   : > { %449 = vmatpush.msra.mxu3 %v231_v31  ;;  %270 = vmatmul.f32.vlgmr.msra.gmra.mxu2 %v213_v32 }
  0x50   : > { %293 = vmatmul.f32.vlgmr.msra.gmra.mxu3 %v214_v33  ;;  %289 = vmatpush.msra.mxu1 %v231_v31 }
  0x51   : > { %267 = vmatmul.f32.vlgmr.msra.gmra.mxu0 %v211_v34  ;;  %290 = vmatmul.f32.vlgmr.msra.gmra.mxu1 %v212_v35 }
  0xce   : > { %v268_v37 = vpop.f32.mrf.mxu0  ;;  %v291_v38 = vpop.f32.mrf.mxu1 }
  0xcf   : > { %v269_v39 = vadd.f32 %v513_v36, %v268_v37 }
  0xd1   : > { %v292_v40 = vadd.f32 %v291_v38, %v269_v39 }
  0xd2   : > { %v271_v41 = vpop.f32.mrf.mxu2 }
  0xd3   : > { %v294_v42 = vpop.f32.mrf.mxu3  ;;  %v272_v43 = vadd.f32 %v513_v36, %v271_v41  ;;  %297 = vst [vmem:[%s208_s28] sm:$0xff] %v292_v40 }
  0xd5   : > { %v295_v44 = vadd.f32 %v294_v42, %v272_v43 }
  0xd7   : > { %298 = vst [vmem:[%s208_s28 + $0x8] sm:$0xff] %v295_v44 }
  0xd8   : > { %601 = shalt.err (!%p598_p10)
}
  0xd9   : > { %s651_s10 = smov 128   ;;  %s652_s18 = smov 8  }
  0xda   : > { %456 = dma.vmem_to_hbm [thread:$0]  (%p740_p7), %s313_s29, 256, %s315_s30, %s300_s16, %s651_s10, %s651_s10, %s652_s18  }
  0xdb PF: > { %s329_s23 = sand.u32 1, %s632_s12   ;;  %p832_p12 = scmp.ge.s32.totalorder %s644_s15, 2 }
  0xdc   : > { %s330_s17 = scalar_lea.sflag [#allocation4], %s329_s23 }
  0xdd   : > { %p467_p13 = pnand %p832_p12, %p708_p6 }
  0xdf   : > { %p468_p0 = pneg %p467_p13 }
  0xe1   : > { %627 = dma.done.wait (%p468_p0), %s330_s17, 256  }
  0xe2   : > { %629 = vsyncadd (%p468_p0), %s330_s17, 4294967040  ;;  %p17_p3 = scmp.ge.s32.totalorder %s726_s26, 4   ;;  %s833_s12 = smov %s636_s13 }
  0xe3   : > { %s834_s13 = smov %s640_s14  ;;  %s835_s14 = smov %s736_s4 }
  0xe4   : > { %s836_s15 = smov %s726_s26  ;;  %19 = sbr.rel (!%p17_p3) target bundleno = 6 (0x6), region = 81 }
  0xe9   :  { %336 = vsyncpa [#allocation3], 1 }
  0xea   :  { %338 = vsyncpa [#allocation3 + $0x1], 1 }
  0xeb   :  { %339 = vsyncpa [#allocation6], 1 }
  0xec   :  { %340 = vsyncpa [#allocation4], 1 }
  0xed   :  { %342 = vsyncpa [#allocation4 + $0x1], 1 }

</bundles_post_ra>
